<compile_context>
chip_gen: v7x
topology: tpu7x:2x2x1
jax: 0.10.0
libtpu: 0.0.40
codegen_flags: <defaults>
</compile_context>

<pallas_src>
import functools

import jax
import jax.numpy as jnp
from jax.experimental import pallas as pl
from jax.experimental.pallas import tpu as pltpu

IN_FEATURES = 28 * 28   # 784
OUT_FEATURES = 10
N_PAD = 128             # lane width for the MXU weight feed
TB_MAX = 2048           # max batch rows per tile (~12.5 MiB double-buffered input)


def _round_up(x, m):
    return ((x + m - 1) // m) * m


def linear_kernel(x_ref, w_ref, b_ref, o_ref):
    # x_ref: (TB, 784)  w_ref: (784, 128)  b_ref: (1, 10)  o_ref: (TB, 10)
    acc = jnp.dot(x_ref[...], w_ref[...], preferred_element_type=jnp.float32)
    o_ref[...] = (acc[:, :OUT_FEATURES] + b_ref[...]).astype(o_ref.dtype)


@functools.partial(jax.jit, static_argnames=())
def mynet_forward(x_nchw, W, b):
    """x_nchw: (B, 1, 28, 28) float32 -> (B, 10) float32."""
    B = x_nchw.shape[0]
    x_flat = x_nchw.reshape(B, IN_FEATURES).astype(jnp.float32)

    # Lane-pad W 10 -> 128 for a lane-dense MXU feed (padded cols are zero and
    # are sliced off in-kernel before the store). Bias stays narrow.
    W_pad = jnp.zeros((IN_FEATURES, N_PAD), jnp.float32).at[:, :OUT_FEATURES].set(W)
    b_row = b.reshape(1, OUT_FEATURES).astype(jnp.float32)

    # Batch tile: sublane-aligned (multiple of 8), at least 2 grid steps when
    # possible (v7x megacore), capped by TB_MAX for VMEM.  No input padding:
    # the ragged last tile relies on Pallas' masked partial-block writeback.
    TB = min(TB_MAX, max(8, _round_up(pl.cdiv(B, 2), 8)))
    grid = (pl.cdiv(B, TB),)

    out = pl.pallas_call(
        linear_kernel,
        out_shape=jax.ShapeDtypeStruct((B, OUT_FEATURES), jnp.float32),
        grid_spec=pltpu.PrefetchScalarGridSpec(
            num_scalar_prefetch=0,
            grid=grid,
            in_specs=[
                # Input: one batch tile per grid step (double-buffered).
                pl.BlockSpec((TB, IN_FEATURES), lambda i: (i, 0)),
                # Weights / bias: constant block index -> VMEM resident.
                pl.BlockSpec((IN_FEATURES, N_PAD), lambda i: (0, 0)),
                pl.BlockSpec((1, OUT_FEATURES), lambda i: (0, 0)),
            ],
            out_specs=pl.BlockSpec((TB, OUT_FEATURES), lambda i: (i, 0)),
        ),
        compiler_params=pltpu.CompilerParams(
            dimension_semantics=("parallel",),
            vmem_limit_bytes=32 * 1024 * 1024,
        ),
        cost_estimate=pl.CostEstimate(
            flops=2 * B * IN_FEATURES * OUT_FEATURES,
            transcendentals=0,
            bytes_accessed=(B * IN_FEATURES * 4
                            + IN_FEATURES * N_PAD * 4
                            + OUT_FEATURES * 4
                            + B * OUT_FEATURES * 4),
        ),
    )(x_flat, W_pad, b_row)

    return out


if __name__ == "__main__":
    key = jax.random.PRNGKey(0)
    k_x, k_w, k_x2 = jax.random.split(key, 3)

    # Deterministic parameters mirroring nn.Parameter(torch.randn(...)) / zeros.
    W = jax.random.normal(k_w, (IN_FEATURES, OUT_FEATURES), dtype=jnp.float32)
    b = jnp.zeros((OUT_FEATURES,), dtype=jnp.float32)

    # Small MNIST-like batch: (B, C=1, H=28, W=28), NCHW like PyTorch.
    B = 8
    x = jax.random.normal(k_x, (B, 1, 28, 28), dtype=jnp.float32)

    out = jax.block_until_ready(mynet_forward(x, W, b))
    ref = x.reshape(B, IN_FEATURES) @ W + b
    assert out.shape == (B, OUT_FEATURES)
    assert jnp.allclose(out, ref, atol=1e-3, rtol=1e-3)

    # Second check exercising the ragged last tile (B not a multiple of TB):
    # B=100 -> TB=56, grid=(2,), last block rows 56..111 masked past 99.
    B2 = 100
    x2 = jax.random.normal(k_x2, (B2, 1, 28, 28), dtype=jnp.float32)
    out2 = jax.block_until_ready(mynet_forward(x2, W, b))
    ref2 = x2.reshape(B2, IN_FEATURES) @ W + b
    assert out2.shape == (B2, OUT_FEATURES)
    assert jnp.allclose(out2, ref2, atol=1e-3, rtol=1e-3)

    print("KERNEL_OK")
</pallas_src>

<mosaic_0001>
module attributes {stable_mosaic.version = 11 : i64} {
  func.func @linear_kernel(%arg0: i32, %arg1: memref<8x784xf32, #tpu.memory_space<vmem>>, %arg2: memref<784x128xf32, #tpu.memory_space<vmem>>, %arg3: memref<1x10xf32, #tpu.memory_space<vmem>>, %arg4: memref<8x10xf32, #tpu.memory_space<vmem>>) attributes {dimension_semantics = [#tpu.dimension_semantics<parallel>], iteration_bounds = array<i64: 1>, scalar_prefetch = 0 : i64, scratch_operands = 0 : i64, tpu.core_type = #tpu.core_type<tc>, window_params = [{transform_indices = @transform_0, window_bounds = array<i64: 8, 784>}, {pipeline_mode = #tpu.pipeline_mode<synchronous>, transform_indices = @transform_1, window_bounds = array<i64: 784, 128>}, {pipeline_mode = #tpu.pipeline_mode<synchronous>, transform_indices = @transform_2, window_bounds = array<i64: 1, 10>}, {transform_indices = @transform_3, window_bounds = array<i64: 8, 10>}]} {
    %c0 = arith.constant 0 : index
    %c0_0 = arith.constant 0 : index
    %0 = vector.load %arg1[%c0, %c0_0] : memref<8x784xf32, #tpu.memory_space<vmem>>, vector<8x784xf32>
    %c0_1 = arith.constant 0 : index
    %c0_2 = arith.constant 0 : index
    %1 = vector.load %arg2[%c0_1, %c0_2] : memref<784x128xf32, #tpu.memory_space<vmem>>, vector<784x128xf32>
    %cst = arith.constant dense<0.000000e+00> : vector<8x128xf32>
    %2 = tpu.matmul %0, %1, %cst {dimension_numbers = #tpu.dot_dimension_numbers<[1], [0], [0], [1], [0, 0, 1, 1], [], []>} : vector<8x784xf32>, vector<784x128xf32>, vector<8x128xf32> -> vector<8x128xf32>
    %3 = vector.extract_strided_slice %2 {offsets = [0, 0], sizes = [8, 10], strides = [1, 1]} : vector<8x128xf32> to vector<8x10xf32>
    %c0_3 = arith.constant 0 : index
    %c0_4 = arith.constant 0 : index
    %4 = vector.load %arg3[%c0_3, %c0_4] : memref<1x10xf32, #tpu.memory_space<vmem>>, vector<1x10xf32>
    %5 = vector.broadcast %4 : vector<1x10xf32> to vector<8x10xf32>
    %6 = arith.addf %3, %5 : vector<8x10xf32>
    %c0_5 = arith.constant 0 : index
    %c0_6 = arith.constant 0 : index
    %7 = vector.load %arg4[%c0_5, %c0_6] : memref<8x10xf32, #tpu.memory_space<vmem>>, vector<8x10xf32>
    tpu.vector_store %arg4[%c0_5, %c0_6], %6 {strides = array<i32>} : memref<8x10xf32, #tpu.memory_space<vmem>>, vector<8x10xf32>,
    return
  }
  func.func @transform_0(%arg0: i32) -> (i32, i32) {
    %c0_i32 = arith.constant 0 : i32
    %c0_i32_0 = arith.constant 0 : i32
    return %arg0, %c0_i32 : i32, i32
  }
  func.func @transform_1(%arg0: i32) -> (i32, i32) {
    %c0_i32 = arith.constant 0 : i32
    %c0_i32_0 = arith.constant 0 : i32
    %c0_i32_1 = arith.constant 0 : i32
    return %c0_i32, %c0_i32_0 : i32, i32
  }
  func.func @transform_2(%arg0: i32) -> (i32, i32) {
    %c0_i32 = arith.constant 0 : i32
    %c0_i32_0 = arith.constant 0 : i32
    %c0_i32_1 = arith.constant 0 : i32
    return %c0_i32, %c0_i32_0 : i32, i32
  }
  func.func @transform_3(%arg0: i32) -> (i32, i32) {
    %c0_i32 = arith.constant 0 : i32
    %c0_i32_0 = arith.constant 0 : i32
    return %arg0, %c0_i32 : i32, i32
  }
}

</mosaic_0001>

<bundles_post_ra>
// kernel: mynet_forward.1
= control target key start
LH: loop header
LB: loop body
LE: loop exit
PB: predicated region body
PF: predicated region fallthrough
CT: control target
= control target key end

     0   :  { %s1026_s0 = inlined_call_operand.vmem [shape: f32[8,784], index: 0, kind: input, shape index: {}]   ;;  %s1027_s1 = inlined_call_operand.vmem [shape: f32[784,128], index: 1, kind: input, shape index: {}]   ;;  %s1028_s2 = inlined_call_operand.vmem [shape: f32[1,10], index: 2, kind: input, shape index: {}]   ;;  %s1029_s3 = inlined_call_operand.hbm [shape: f32[8,10], index: 3, kind: output, shape index: {}]  }
   0x1   :  { %v38_v0 = vld [vmem:[%s1027_s1 + $0x80] sm:$0xff]  ;;  %v39_v1 = vld [vmem:[%s1027_s1 + $0x88] sm:$0xff]  ;;  %v40_v11 = vld [vmem:[%s1027_s1 + $0x90] sm:$0xff] }
   0x2   :  { %v70_v2 = vld [vmem:[%s1027_s1 + $0x180] sm:$0xff]  ;;  %v545_v3 = vpack.c.bf16 %v39_v1, %v38_v0  ;;  %v71_v4 = vld [vmem:[%s1027_s1 + $0x188] sm:$0xff]  ;;  %v41_v13 = vld [vmem:[%s1027_s1 + $0x98] sm:$0xff] }
   0x3   :  { %v22_v5 = vld [vmem:[%s1027_s1] sm:$0xff]  ;;  %v23_v6 = vld [vmem:[%s1027_s1 + $0x8] sm:$0xff]  ;;  %v577_v7 = vpack.c.bf16 %v71_v4, %v70_v2  ;;  %v72_v14 = vld [vmem:[%s1027_s1 + $0x190] sm:$0xff]  ;;  %v549_v16 = vpack.c.bf16 %v41_v13, %v40_v11 }
   0x4   :  { %v547_v8 = vpack.c.bf16 %v23_v6, %v22_v5  ;;  %v54_v9 = vld [vmem:[%s1027_s1 + $0x100] sm:$0xff]  ;;  %v55_v10 = vld [vmem:[%s1027_s1 + $0x108] sm:$0xff]  ;;  %546 = vmatprep.subr.bf16.mxu0 %v545_v3  ;;  %v73_v15 = vld [vmem:[%s1027_s1 + $0x198] sm:$0xff] }
   0x5   :  { %v579_v12 = vpack.c.bf16 %v55_v10, %v54_v9  ;;  %578 = vmatprep.subr.bf16.mxu1 %v577_v7  ;;  %v581_v17 = vpack.c.bf16 %v73_v15, %v72_v14  ;;  %v24_v18 = vld [vmem:[%s1027_s1 + $0x10] sm:$0xff]  ;;  %v25_v19 = vld [vmem:[%s1027_s1 + $0x18] sm:$0xff]  ;;  %v42_v23 = vld [vmem:[%s1027_s1 + $0xa0] sm:$0xff] }
   0x6   :  { %548 = vmatpush3.bf16.msra.mxu0 %v547_v8  ;;  %v56_v20 = vld [vmem:[%s1027_s1 + $0x110] sm:$0xff]  ;;  %v551_v21 = vpack.c.bf16 %v25_v19, %v24_v18  ;;  %v57_v22 = vld [vmem:[%s1027_s1 + $0x118] sm:$0xff]  ;;  %v43_v24 = vld [vmem:[%s1027_s1 + $0xa8] sm:$0xff] }
   0x7   :  { %580 = vmatpush3.bf16.msra.mxu1 %v579_v12  ;;  %550 = vmatprep.subr.bf16.mxu0 %v549_v16  ;;  %v583_v25 = vpack.c.bf16 %v57_v22, %v56_v20  ;;  %v553_v26 = vpack.c.bf16 %v43_v24, %v42_v23  ;;  %v74_v27 = vld [vmem:[%s1027_s1 + $0x1a0] sm:$0xff]  ;;  %v75_v28 = vld [vmem:[%s1027_s1 + $0x1a8] sm:$0xff]  ;;  %v44_v35 = vld [vmem:[%s1027_s1 + $0xb0] sm:$0xff] }
   0x8   :  { %582 = vmatprep.subr.bf16.mxu1 %v581_v17  ;;  %v26_v29 = vld [vmem:[%s1027_s1 + $0x20] sm:$0xff]  ;;  %v585_v30 = vpack.c.bf16 %v75_v28, %v74_v27  ;;  %v27_v31 = vld [vmem:[%s1027_s1 + $0x28] sm:$0xff]  ;;  %v45_v36 = vld [vmem:[%s1027_s1 + $0xb8] sm:$0xff] }
   0x9   :  { %v58_v32 = vld [vmem:[%s1027_s1 + $0x120] sm:$0xff]  ;;  %v59_v33 = vld [vmem:[%s1027_s1 + $0x128] sm:$0xff]  ;;  %v555_v34 = vpack.c.bf16 %v27_v31, %v26_v29  ;;  %v76_v37 = vld [vmem:[%s1027_s1 + $0x1b0] sm:$0xff]  ;;  %v557_v39 = vpack.c.bf16 %v45_v36, %v44_v35 }
   0xa   :  { %552 = vmatpush3.bf16.msra.mxu0 %v551_v21  ;;  %v587_v38 = vpack.c.bf16 %v59_v33, %v58_v32  ;;  %v77_v40 = vld [vmem:[%s1027_s1 + $0x1b8] sm:$0xff]  ;;  %v28_v41 = vld [vmem:[%s1027_s1 + $0x30] sm:$0xff]  ;;  %v46_v46 = vld [vmem:[%s1027_s1 + $0xc0] sm:$0xff] }
   0xb   :  { %584 = vmatpush3.bf16.msra.mxu1 %v583_v25  ;;  %554 = vmatprep.subr.bf16.mxu0 %v553_v26  ;;  %v29_v42 = vld [vmem:[%s1027_s1 + $0x38] sm:$0xff]  ;;  %v589_v43 = vpack.c.bf16 %v77_v40, %v76_v37  ;;  %v60_v44 = vld [vmem:[%s1027_s1 + $0x130] sm:$0xff]  ;;  %v47_v47 = vld [vmem:[%s1027_s1 + $0xc8] sm:$0xff] }
   0xc   :  { %586 = vmatprep.subr.bf16.mxu1 %v585_v30  ;;  %v61_v45 = vld [vmem:[%s1027_s1 + $0x138] sm:$0xff]  ;;  %v78_v48 = vld [vmem:[%s1027_s1 + $0x1c0] sm:$0xff]  ;;  %v79_v49 = vld [vmem:[%s1027_s1 + $0x1c8] sm:$0xff]  ;;  %v559_v50 = vpack.c.bf16 %v29_v42, %v28_v41  ;;  %v561_v52 = vpack.c.bf16 %v47_v47, %v46_v46 }
   0xd   :  { %v591_v51 = vpack.c.bf16 %v61_v45, %v60_v44  ;;  %v30_v53 = vld [vmem:[%s1027_s1 + $0x40] sm:$0xff]  ;;  %v31_v54 = vld [vmem:[%s1027_s1 + $0x48] sm:$0xff]  ;;  %v593_v56 = vpack.c.bf16 %v79_v49, %v78_v48  ;;  %v48_v58 = vld [vmem:[%s1027_s1 + $0xd0] sm:$0xff] }
   0xe   :  { %556 = vmatpush3.bf16.msra.mxu0 %v555_v34  ;;  %v62_v55 = vld [vmem:[%s1027_s1 + $0x140] sm:$0xff]  ;;  %v63_v57 = vld [vmem:[%s1027_s1 + $0x148] sm:$0xff]  ;;  %v49_v59 = vld [vmem:[%s1027_s1 + $0xd8] sm:$0xff]  ;;  %v563_v62 = vpack.c.bf16 %v31_v54, %v30_v53 }
   0xf   :  { %588 = vmatpush3.bf16.msra.mxu1 %v587_v38  ;;  %558 = vmatprep.subr.bf16.mxu0 %v557_v39  ;;  %v80_v60 = vld [vmem:[%s1027_s1 + $0x1d0] sm:$0xff]  ;;  %v81_v61 = vld [vmem:[%s1027_s1 + $0x1d8] sm:$0xff]  ;;  %v595_v63 = vpack.c.bf16 %v63_v57, %v62_v55  ;;  %v565_v0 = vpack.c.bf16 %v49_v59, %v48_v58  ;;  %v50_v6 = vld [vmem:[%s1027_s1 + $0xe0] sm:$0xff] }
  0x10   :  { %590 = vmatprep.subr.bf16.mxu1 %v589_v43  ;;  %v32_v1 = vld [vmem:[%s1027_s1 + $0x50] sm:$0xff]  ;;  %v33_v2 = vld [vmem:[%s1027_s1 + $0x58] sm:$0xff]  ;;  %v597_v4 = vpack.c.bf16 %v81_v61, %v80_v60  ;;  %v51_v7 = vld [vmem:[%s1027_s1 + $0xe8] sm:$0xff] }
  0x11   :  { %v64_v3 = vld [vmem:[%s1027_s1 + $0x150] sm:$0xff]  ;;  %v65_v5 = vld [vmem:[%s1027_s1 + $0x158] sm:$0xff]  ;;  %v82_v8 = vld [vmem:[%s1027_s1 + $0x1e0] sm:$0xff]  ;;  %v567_v10 = vpack.c.bf16 %v33_v2, %v32_v1  ;;  %v569_v14 = vpack.c.bf16 %v51_v7, %v50_v6 }
  0x12   :  { %560 = vmatpush3.bf16.msra.mxu0 %v559_v50  ;;  %v83_v9 = vld [vmem:[%s1027_s1 + $0x1e8] sm:$0xff]  ;;  %v34_v11 = vld [vmem:[%s1027_s1 + $0x60] sm:$0xff]  ;;  %v599_v13 = vpack.c.bf16 %v65_v5, %v64_v3  ;;  %v18_v17 = vld [vmem:[%s1026_s0 + $0x18] sm:$0xff]  ;;  %v672_v50 = vmov 0.0|0.0  }
  0x13   :  { %592 = vmatpush3.bf16.msra.mxu1 %v591_v51  ;;  %562 = vmatprep.subr.bf16.mxu0 %v561_v52  ;;  %v35_v12 = vld [vmem:[%s1027_s1 + $0x68] sm:$0xff]  ;;  %v66_v15 = vld [vmem:[%s1027_s1 + $0x160] sm:$0xff]  ;;  %v601_v18 = vpack.c.bf16 %v83_v9, %v82_v8  ;;  %v52_v20 = vld [vmem:[%s1027_s1 + $0xf0] sm:$0xff] }
  0x14   :  { %594 = vmatprep.subr.bf16.mxu1 %v593_v56  ;;  %v16_v16 = vld [vmem:[%s1026_s0 + $0x8] sm:$0xff]  ;;  %v53_v21 = vld [vmem:[%s1027_s1 + $0xf8] sm:$0xff]  ;;  %v84_v22 = vld [vmem:[%s1027_s1 + $0x1f0] sm:$0xff]  ;;  %258 = vmatprep.mubr.f32.mxu1 %v18_v17  ;;  %v571_v24 = vpack.c.bf16 %v35_v12, %v34_v11 }
  0x15   :  { %v67_v19 = vld [vmem:[%s1027_s1 + $0x168] sm:$0xff]  ;;  %188 = vmatprep.mubr.f32.mxu0 %v16_v16  ;;  %v85_v23 = vld [vmem:[%s1027_s1 + $0x1f8] sm:$0xff]  ;;  %v573_v26 = vpack.c.bf16 %v53_v21, %v52_v20  ;;  %v36_v27 = vld [vmem:[%s1027_s1 + $0x70] sm:$0xff] }
  0x16   :  { %564 = vmatpush3.bf16.msra.mxu0 %v563_v62  ;;  %v603_v25 = vpack.c.bf16 %v67_v19, %v66_v15  ;;  %v37_v28 = vld [vmem:[%s1027_s1 + $0x78] sm:$0xff]  ;;  %v68_v29 = vld [vmem:[%s1027_s1 + $0x170] sm:$0xff]  ;;  %v605_v30 = vpack.c.bf16 %v85_v23, %v84_v22  ;;  %v102_v32 = vld [vmem:[%s1027_s1 + $0x280] sm:$0xff] }
  0x17   :  { %596 = vmatpush3.bf16.msra.mxu1 %v595_v63  ;;  %566 = vmatprep.subr.bf16.mxu0 %v565_v0  ;;  %v69_v31 = vld [vmem:[%s1027_s1 + $0x178] sm:$0xff]  ;;  %v103_v33 = vld [vmem:[%s1027_s1 + $0x288] sm:$0xff]  ;;  %v575_v34 = vpack.c.bf16 %v37_v28, %v36_v27  ;;  %v86_v37 = vld [vmem:[%s1027_s1 + $0x200] sm:$0xff] }
  0x18   :  { %598 = vmatprep.subr.bf16.mxu1 %v597_v4  ;;  %v607_v35 = vpack.c.bf16 %v69_v31, %v68_v29  ;;  %v609_v36 = vpack.c.bf16 %v103_v33, %v102_v32  ;;  %v87_v38 = vld [vmem:[%s1027_s1 + $0x208] sm:$0xff]  ;;  %v104_v39 = vld [vmem:[%s1027_s1 + $0x290] sm:$0xff]  ;;  %v105_v40 = vld [vmem:[%s1027_s1 + $0x298] sm:$0xff] }
  0x19   :  { %v15_v41 = vld [vmem:[%s1026_s0] sm:$0xff]  ;;  %v17_v42 = vld [vmem:[%s1026_s0 + $0x10] sm:$0xff]  ;;  %v611_v43 = vpack.c.bf16 %v87_v38, %v86_v37  ;;  %v613_v45 = vpack.c.bf16 %v105_v40, %v104_v39  ;;  %v89_v46 = vld [vmem:[%s1027_s1 + $0x218] sm:$0xff] }
  0x1a   :  { %568 = vmatpush3.bf16.msra.mxu0 %v567_v10  ;;  %v88_v44 = vld [vmem:[%s1027_s1 + $0x210] sm:$0xff]  ;;  %v106_v47 = vld [vmem:[%s1027_s1 + $0x2a0] sm:$0xff]  ;;  %v107_v48 = vld [vmem:[%s1027_s1 + $0x2a8] sm:$0xff] }
  0x1b   :  { %600 = vmatpush3.bf16.msra.mxu1 %v599_v13  ;;  %570 = vmatprep.subr.bf16.mxu0 %v569_v14  ;;  %v20_v49 = vld [vmem:[%s1026_s0 + $0x28] sm:$0xff]  ;;  %v118_v51 = vld [vmem:[%s1027_s1 + $0x300] sm:$0xff] }
  0x1c   :  { %602 = vmatprep.subr.bf16.mxu1 %v601_v18  ;;  %v119_v52 = vld [vmem:[%s1027_s1 + $0x308] sm:$0xff] }
  0x1d   :  { %v642_v53 = vpack.c.bf16 %v119_v52, %v118_v51 }
  0x1e   :  { %572 = vmatpush3.bf16.msra.mxu0 %v571_v24 }
  0x1f   :  { %604 = vmatpush3.bf16.msra.mxu1 %v603_v25  ;;  %574 = vmatprep.subr.bf16.mxu0 %v573_v26 }
  0x20   :  { %606 = vmatprep.subr.bf16.mxu1 %v605_v30 }
  0x22   :  { %576 = vmatpush3.bf16.msra.mxu0 %v575_v34 }
  0x23   :  { %608 = vmatpush3.bf16.msra.mxu1 %v607_v35  ;;  %610 = vmatprep.subr.bf16.mxu0 %v609_v36 }
  0x24   :  { %641 = vmatprep.subr.bf16.mxu1 %v672_v50 }
  0x25   :  { %189 = vmatmul.mubr.f32.vlgmr.msra.gmra.mrb[0].mxu0 %v15_v41 }
  0x26   :  { %8 = vsyncpa [#allocation3], 0  ;;  %259 = vmatmul.mubr.f32.vlgmr.msra.gmra.mrb[0].mxu1 %v17_v42  ;;  %612 = vmatpush3.bf16.msra.mxu0 %v611_v43  ;;  %v615_v54 = vpack.c.bf16 %v89_v46, %v88_v44  ;;  %v617_v55 = vpack.c.bf16 %v107_v48, %v106_v47  ;;  %v90_v56 = vld [vmem:[%s1027_s1 + $0x220] sm:$0xff]  ;;  %v91_v57 = vld [vmem:[%s1027_s1 + $0x228] sm:$0xff]  ;;  %vm673_vm0 = vmmov 0   ;;  %v674_v60 = vmov 0.0  }
  0x27   :  { %614 = vmatprep.subr.bf16.mxu0 %v613_v45  ;;  %328 = vmatprep.mubr.f32.mxu0 %v20_v49  ;;  %v108_v58 = vld [vmem:[%s1027_s1 + $0x2b0] sm:$0xff]  ;;  %v109_v59 = vld [vmem:[%s1027_s1 + $0x2b8] sm:$0xff]  ;;  %vm120_vm1 = vcmask 130048   ;;  %v619_v62 = vpack.c.bf16 %v91_v57, %v90_v56  ;;  %v110_v2 = vld [vmem:[%s1027_s1 + $0x2c0] sm:$0xff]  ;;  %s675_s7 = smov [#allocation2]   ;;  %vm412_vm2 = vcmask 80896  }
  0x28   :  { %643 = vmatpush3.bf16.msra.mxu1 %v642_v53  ;;  %542 = vmatprep.mubr.msk.f32.mxu1 %vm673_vm0, %v674_v60  ;;  %v21_v61 = vld [vmem:[%s1026_s0 + $0x30] sm:$0xff]  ;;  %v621_v63 = vpack.c.bf16 %v109_v59, %v108_v58  ;;  %v93_v1 = vld [vmem:[%s1027_s1 + $0x238] sm:$0xff]  ;;  %v111_v3 = vld [vmem:[%s1027_s1 + $0x2c8] sm:$0xff] }
  0x29   :  { %v92_v0 = vld [vmem:[%s1027_s1 + $0x230] sm:$0xff]  ;;  %v625_v5 = vpack.c.bf16 %v111_v3, %v110_v2  ;;  %v94_v6 = vld [vmem:[%s1027_s1 + $0x240] sm:$0xff]  ;;  %v95_v7 = vld [vmem:[%s1027_s1 + $0x248] sm:$0xff] }
  0x2a   :  { %616 = vmatpush3.bf16.msra.mxu0 %v615_v54  ;;  %v623_v4 = vpack.c.bf16 %v93_v1, %v92_v0  ;;  %v112_v8 = vld [vmem:[%s1027_s1 + $0x2d0] sm:$0xff]  ;;  %v113_v9 = vld [vmem:[%s1027_s1 + $0x2d8] sm:$0xff]  ;;  %v627_v10 = vpack.c.bf16 %v95_v7, %v94_v6  ;;  %v114_v14 = vld [vmem:[%s1027_s1 + $0x2e0] sm:$0xff] }
  0x2b   :  { %618 = vmatprep.subr.bf16.mxu0 %v617_v55  ;;  %543 = vmatmul.mubr.msk.f32.vlgmr.msra.gmra.mrb[2].mxu1 %vm120_vm1, %v21_v61  ;;  %v629_v11 = vpack.c.bf16 %v113_v9, %v112_v8  ;;  %v96_v12 = vld [vmem:[%s1027_s1 + $0x250] sm:$0xff]  ;;  %v97_v13 = vld [vmem:[%s1027_s1 + $0x258] sm:$0xff]  ;;  %v115_v15 = vld [vmem:[%s1027_s1 + $0x2e8] sm:$0xff] }
  0x2c   :  { %v631_v16 = vpack.c.bf16 %v97_v13, %v96_v12  ;;  %v633_v17 = vpack.c.bf16 %v115_v15, %v114_v14  ;;  %v98_v18 = vld [vmem:[%s1027_s1 + $0x260] sm:$0xff]  ;;  %v99_v19 = vld [vmem:[%s1027_s1 + $0x268] sm:$0xff]  ;;  %v116_v20 = vld [vmem:[%s1027_s1 + $0x2f0] sm:$0xff] }
  0x2d   :  { %v117_v21 = vld [vmem:[%s1027_s1 + $0x2f8] sm:$0xff]  ;;  %v635_v22 = vpack.c.bf16 %v99_v19, %v98_v18  ;;  %v100_v24 = vld [vmem:[%s1027_s1 + $0x270] sm:$0xff]  ;;  %v19_v27 = vld [vmem:[%s1026_s0 + $0x20] sm:$0xff]  ;;  %s420_s0 = sshll.u32 %s675_s7, 4  ;;  %s421_s0 = int_to_ptr.vmem [resolvable:$true] %s420_s0 }
  0x2e   :  { %620 = vmatpush3.bf16.msra.mxu0 %v619_v62  ;;  %v637_v23 = vpack.c.bf16 %v117_v21, %v116_v20  ;;  %v101_v25 = vld [vmem:[%s1027_s1 + $0x278] sm:$0xff]  ;;  %v429_v41 = vld [vmem:[%s1028_s2] ss:$0 sm:$0xff]  ;;  %s648_s8 = scalar_lea.vmem %s421_s0, 128  ;;  %p653_p1 = scmp.lt.s32.totalorder %s421_s0, %s421_s0 }
  0x2f   :  { %622 = vmatprep.subr.bf16.mxu0 %v621_v63  ;;  %v639_v26 = vpack.c.bf16 %v101_v25, %v100_v24  ;;  %p649_p0 = scmp.ne.s32.totalorder %s421_s0, %s648_s8  ;;  %p654_p2 = scmp.lt.s32.totalorder %s648_s8, %s648_s8 }
  0x31   :  { %p655_p3 = por %p654_p2, %p653_p1 }
  0x32   :  { %624 = vmatpush3.bf16.msra.mxu0 %v623_v4 }
  0x33   :  { %626 = vmatprep.subr.bf16.mxu0 %v625_v5  ;;  %p656_p4 = pnand %p655_p3, %p649_p0 }
  0x36   :  { %628 = vmatpush3.bf16.msra.mxu0 %v627_v10 }
  0x37   :  { %630 = vmatprep.subr.bf16.mxu0 %v629_v11 }
  0x3a   :  { %632 = vmatpush3.bf16.msra.mxu0 %v631_v16 }
  0x3b   :  { %634 = vmatprep.subr.bf16.mxu0 %v633_v17 }
  0x3e   :  { %636 = vmatpush3.bf16.msra.mxu0 %v635_v22 }
  0x3f   :  { %638 = vmatprep.subr.bf16.mxu0 %v637_v23 }
  0x42   :  { %640 = vmatpush3.bf16.msra.mxu0 %v639_v26 }
  0x45   :  { %329 = vmatmul.mubr.f32.vlgmr.msra.gmra.mrb[2].mxu0 %v19_v27 }
  0xf8   :  { %v462_v28 = vpop.f32.mrb[0].mxu0 }
  0xf9   :  { %v497_v29 = vpop.f32.mrb[0].mxu1  ;;  %v463_v30 = vpop.f32.mrb[1].mxu0 }
  0xfa   :  { %v464_v31 = vadd.f32 %v463_v30, %v462_v28  ;;  %v498_v32 = vpop.f32.mrb[1].mxu1 }
  0xfb   :  { %v499_v33 = vadd.f32 %v498_v32, %v497_v29 }
  0xfd   :  { %v261_v34 = vadd.f32 %v499_v33, %v464_v31 }
  0xfe   :  { %v400_v35 = vpop.f32.mrb[2].mxu1 }
  0xff   :  { %v544_v36 = vpop.f32.mrb[3].mxu1 }
 0x118   :  { %v532_v37 = vpop.f32.mrb[2].mxu0 }
 0x119   :  { %v533_v38 = vpop.f32.mrb[3].mxu0 }
 0x11a   :  { %v534_v39 = vadd.f32 %v533_v38, %v532_v37 }
 0x11c   :  { %v331_v40 = vadd.f32 %v534_v39, %v261_v34 }
 0x11e   :  { %v401_v42 = vadd.f32 %v400_v35, %v331_v40 }
 0x120   :  { %v411_v43 = vadd.f32 %v429_v41, %v401_v42 }
 0x122   :  { %413 = vst.msk [vmem:[#allocation2] sm:$0xff] %vm412_vm2, %v411_v43 }
 0x123   :  { %659 = shalt.err (!%p656_p4)
}
 0x124   :  { %s660_s11 = scalar_lea.hbm %s1029_s3, 128 }
 0x125   :  { %p661_p5 = scmp.ne.s32.totalorder %s1029_s3, %s660_s11  ;;  %p664_p6 = scmp.lt.u32.totalorder %s660_s11, %s1029_s3 }
 0x127   :  { %p666_p7 = pnand %p664_p6, %p661_p5 }
 0x129   :  { %669 = shalt.err (!%p666_p7)
}
 0x12a   :  { %423 = dma.vmem_to_hbm [thread:$0]  %s421_s0, 128, %s1029_s3, [#allocation3]  }
 0x12b   :  { %670 = dma.done.wait [#allocation3], 128  }
 0x12c   :  { %671 = vsyncadd [#allocation3], 4294967168 }
 0x12d   :  { %427 = vsyncpa [#allocation3], 1 }

</bundles_post_ra>
